<compile_context>
chip_gen: v7x
topology: tpu7x:2x2x1
jax: 0.10.0
libtpu: 0.0.40
codegen_flags: <defaults>
</compile_context>

<pallas_src>
import jax
import jax.numpy as jnp
from jax.experimental import pallas as pl
from jax.experimental.pallas import tpu as pltpu


def _conv_block10_kernel(x_ref, w1_ref, b1_ref, w2_ref, b2_ref, o_ref):
    # x_ref:  (1, Cin,  TM)   channel-major tile, spatial on lanes (streamed)
    # w1_ref: (Chid, Cin)     layer1 weight, as stored by PyTorch (resident)
    # b1_ref: (Chid, 1)       f32 bias column
    # w2_ref: (Cout, Chid)    layer3 weight (resident)
    # b2_ref: (Cout, 1)
    # o_ref:  (1, Cout, TM)   lane-dense output tile
    x = x_ref[0]                                                  # (Cin, TM)

    h = jnp.dot(w1_ref[...], x, preferred_element_type=jnp.float32)
    h = jnp.maximum(h + b1_ref[...], 0.0)                         # ReLU (layer1)

    h = h.astype(w2_ref.dtype)                                    # bf16 MXU path if requested
    y = jnp.dot(w2_ref[...], h, preferred_element_type=jnp.float32)
    y = jnp.maximum(y + b2_ref[...], 0.0)                         # ReLU (layer3)

    o_ref[0] = y.astype(o_ref.dtype)


def conv_block10(x_nchw, params, *, tile_m=1024, compute_dtype=jnp.float32):
    """Fused _ConvBlock10 forward for an NCHW input; returns NCHW in x's dtype."""
    w1, b1, w2, b2 = params    # w1:(Chid,Cin)  b1:(Chid,)  w2:(Cout,Chid)  b2:(Cout,)
    n, cin, hh, ww = x_nchw.shape
    chid = w1.shape[0]
    cout = w2.shape[0]
    out_dtype = x_nchw.dtype

    # ---- tiling along the flattened per-image spatial axis (lane axis) ----
    m = hh * ww
    tm = max(128, min(int(tile_m), -(-m // 128) * 128))
    tm = -(-tm // 128) * 128                    # multiple of 128 (lane-dense stores)
    m_pad = -(-m // tm) * tm                    # pad M up to a multiple of tm

    x3d = x_nchw.reshape(n, cin, m)             # free reshape: NCHW is channel-major
    if m_pad != m:
        x3d = jnp.pad(x3d, ((0, 0), (0, 0), (0, m_pad - m)))
    x3d = x3d.astype(compute_dtype)

    w1c = jnp.asarray(w1, compute_dtype)
    w2c = jnp.asarray(w2, compute_dtype)
    b1c = jnp.asarray(b1, jnp.float32).reshape(chid, 1)   # added post f32 accumulation
    b2c = jnp.asarray(b2, jnp.float32).reshape(cout, 1)

    # ---- explicit VMEM budget (works across 16/32/64 MiB scoped defaults) ----
    comp_bytes = jnp.dtype(compute_dtype).itemsize
    out_bytes = jnp.dtype(out_dtype).itemsize
    tile_bytes = (2 * cin * tm * comp_bytes             # double-buffered x tiles
                  + 2 * cout * tm * out_bytes           # double-buffered out tiles
                  + chid * tm * 4                       # f32 intermediate h
                  + (chid * cin + cout * chid) * comp_bytes
                  + (chid + cout) * 4)
    vmem_limit = int(min(max(4 * tile_bytes, 8 << 20), 48 << 20))

    grid = (n, m_pad // tm)
    out3d = pl.pallas_call(
        _conv_block10_kernel,
        out_shape=jax.ShapeDtypeStruct((n, cout, m_pad), out_dtype),
        grid_spec=pltpu.PrefetchScalarGridSpec(
            num_scalar_prefetch=0,
            grid=grid,
            in_specs=[
                pl.BlockSpec((1, cin, tm), lambda b, i: (b, 0, i)),   # x tile (streamed)
                pl.BlockSpec((chid, cin), lambda b, i: (0, 0)),       # W1 (resident)
                pl.BlockSpec((chid, 1), lambda b, i: (0, 0)),         # b1
                pl.BlockSpec((cout, chid), lambda b, i: (0, 0)),      # W2 (resident)
                pl.BlockSpec((cout, 1), lambda b, i: (0, 0)),         # b2
            ],
            out_specs=pl.BlockSpec((1, cout, tm), lambda b, i: (b, 0, i)),
        ),
        compiler_params=pltpu.CompilerParams(
            dimension_semantics=("parallel", "parallel"),
            vmem_limit_bytes=vmem_limit),
    )(x3d, w1c, b1c, w2c, b2c)

    if m_pad != m:
        out3d = out3d[:, :, :m]
    return out3d.reshape(n, cout, hh, ww)


def init_params(key, in_channels, out_channels):
    """Deterministic synthetic parameters (PyTorch-like uniform fan-in init)."""
    chid = 3 * in_channels
    k1, k2, k3, k4 = jax.random.split(key, 4)
    bound1 = 1.0 / jnp.sqrt(in_channels)
    bound2 = 1.0 / jnp.sqrt(chid)
    w1 = jax.random.uniform(k1, (chid, in_channels), jnp.float32, -bound1, bound1)
    b1 = jax.random.uniform(k2, (chid,), jnp.float32, -bound1, bound1)
    w2 = jax.random.uniform(k3, (out_channels, chid), jnp.float32, -bound2, bound2)
    b2 = jax.random.uniform(k4, (out_channels,), jnp.float32, -bound2, bound2)
    return w1, b1, w2, b2


def reference(x_nchw, params):
    """Plain-JAX reference of the same forward pass (1x1 conv == per-pixel linear)."""
    w1, b1, w2, b2 = params
    h = jnp.maximum(jnp.einsum("oc,nchw->nohw", w1, x_nchw)
                    + b1[None, :, None, None], 0.0)
    y = jnp.maximum(jnp.einsum("oc,nchw->nohw", w2, h)
                    + b2[None, :, None, None], 0.0)
    return y


if __name__ == "__main__":
    key = jax.random.PRNGKey(0)
    kx, kp = jax.random.split(key)

    batch, in_channels, out_channels, spatial = 2, 4, 8, 16
    x = jax.random.normal(kx, (batch, in_channels, spatial, spatial), jnp.float32)
    params = init_params(kp, in_channels, out_channels)
    ref = reference(x, params)

    # f32 compute path: tight correctness check against the plain-JAX reference.
    out_f32 = jax.block_until_ready(conv_block10(x, params, compute_dtype=jnp.float32))
    assert out_f32.shape == (batch, out_channels, spatial, spatial)
    assert jnp.allclose(out_f32, ref, atol=1e-5, rtol=1e-5)

    # bf16 compute path (halves HBM traffic on the streamed operands): loose check.
    out_bf16 = jax.block_until_ready(conv_block10(x, params, compute_dtype=jnp.bfloat16))
    assert out_bf16.shape == (batch, out_channels, spatial, spatial)
    assert jnp.allclose(out_bf16, ref, atol=1e-1, rtol=1e-1)

    print("KERNEL_OK")
</pallas_src>

<mosaic_0001>
module attributes {stable_mosaic.version = 11 : i64} {
  func.func @_conv_block10_kernel(%arg0: i32, %arg1: i32, %arg2: memref<1x4x256xf32, #tpu.memory_space<vmem>>, %arg3: memref<12x4xf32, #tpu.memory_space<vmem>>, %arg4: memref<12x1xf32, #tpu.memory_space<vmem>>, %arg5: memref<8x12xf32, #tpu.memory_space<vmem>>, %arg6: memref<8x1xf32, #tpu.memory_space<vmem>>, %arg7: memref<1x8x256xf32, #tpu.memory_space<vmem>>) attributes {dimension_semantics = [#tpu.dimension_semantics<parallel>, #tpu.dimension_semantics<parallel>], iteration_bounds = array<i64: 2, 1>, scalar_prefetch = 0 : i64, scratch_operands = 0 : i64, tpu.core_type = #tpu.core_type<tc>, window_params = [{transform_indices = @transform_0, window_bounds = array<i64: 1, 4, 256>}, {pipeline_mode = #tpu.pipeline_mode<synchronous>, transform_indices = @transform_1, window_bounds = array<i64: 12, 4>}, {pipeline_mode = #tpu.pipeline_mode<synchronous>, transform_indices = @transform_2, window_bounds = array<i64: 12, 1>}, {pipeline_mode = #tpu.pipeline_mode<synchronous>, transform_indices = @transform_3, window_bounds = array<i64: 8, 12>}, {pipeline_mode = #tpu.pipeline_mode<synchronous>, transform_indices = @transform_4, window_bounds = array<i64: 8, 1>}, {transform_indices = @transform_5, window_bounds = array<i64: 1, 8, 256>}]} {
    %c0 = arith.constant 0 : index
    %c0_0 = arith.constant 0 : index
    %c0_1 = arith.constant 0 : index
    %0 = vector.load %arg2[%c0, %c0_0, %c0_1] : memref<1x4x256xf32, #tpu.memory_space<vmem>>, vector<1x4x256xf32>
    %1 = vector.shape_cast %0 : vector<1x4x256xf32> to vector<4x256xf32>
    %c0_2 = arith.constant 0 : index
    %c0_3 = arith.constant 0 : index
    %2 = vector.load %arg3[%c0_2, %c0_3] : memref<12x4xf32, #tpu.memory_space<vmem>>, vector<12x4xf32>
    %cst = arith.constant dense<0.000000e+00> : vector<12x256xf32>
    %3 = tpu.matmul %2, %1, %cst {dimension_numbers = #tpu.dot_dimension_numbers<[1], [0], [0], [1], [0, 0, 1, 1], [], []>} : vector<12x4xf32>, vector<4x256xf32>, vector<12x256xf32> -> vector<12x256xf32>
    %c0_4 = arith.constant 0 : index
    %c0_5 = arith.constant 0 : index
    %4 = vector.load %arg4[%c0_4, %c0_5] : memref<12x1xf32, #tpu.memory_space<vmem>>, vector<12x1xf32>
    %5 = vector.broadcast %4 : vector<12x1xf32> to vector<12x256xf32>
    %6 = arith.addf %3, %5 : vector<12x256xf32>
    %cst_6 = arith.constant 0.000000e+00 : f32
    %7 = vector.broadcast %cst_6 : f32 to vector<12x256xf32>
    %8 = arith.maximumf %6, %7 : vector<12x256xf32>
    %c0_7 = arith.constant 0 : index
    %c0_8 = arith.constant 0 : index
    %9 = vector.load %arg5[%c0_7, %c0_8] : memref<8x12xf32, #tpu.memory_space<vmem>>, vector<8x12xf32>
    %cst_9 = arith.constant dense<0.000000e+00> : vector<8x256xf32>
    %10 = tpu.matmul %9, %8, %cst_9 {dimension_numbers = #tpu.dot_dimension_numbers<[1], [0], [0], [1], [0, 0, 1, 1], [], []>} : vector<8x12xf32>, vector<12x256xf32>, vector<8x256xf32> -> vector<8x256xf32>
    %c0_10 = arith.constant 0 : index
    %c0_11 = arith.constant 0 : index
    %11 = vector.load %arg6[%c0_10, %c0_11] : memref<8x1xf32, #tpu.memory_space<vmem>>, vector<8x1xf32>
    %12 = vector.broadcast %11 : vector<8x1xf32> to vector<8x256xf32>
    %13 = arith.addf %10, %12 : vector<8x256xf32>
    %cst_12 = arith.constant 0.000000e+00 : f32
    %14 = vector.broadcast %cst_12 : f32 to vector<8x256xf32>
    %15 = arith.maximumf %13, %14 : vector<8x256xf32>
    %c0_13 = arith.constant 0 : index
    %c0_14 = arith.constant 0 : index
    %c0_15 = arith.constant 0 : index
    %16 = vector.load %arg7[%c0_13, %c0_14, %c0_15] : memref<1x8x256xf32, #tpu.memory_space<vmem>>, vector<1x8x256xf32>
    %17 = vector.shape_cast %16 : vector<1x8x256xf32> to vector<8x256xf32>
    %18 = vector.shape_cast %15 : vector<8x256xf32> to vector<1x8x256xf32>
    tpu.vector_store %arg7[%c0_13, %c0_14, %c0_15], %18 {strides = array<i32>} : memref<1x8x256xf32, #tpu.memory_space<vmem>>, vector<1x8x256xf32>,
    return
  }
  func.func @transform_0(%arg0: i32, %arg1: i32) -> (i32, i32, i32) {
    %c0_i32 = arith.constant 0 : i32
    %c0_i32_0 = arith.constant 0 : i32
    return %arg0, %c0_i32, %arg1 : i32, i32, i32
  }
  func.func @transform_1(%arg0: i32, %arg1: i32) -> (i32, i32) {
    %c0_i32 = arith.constant 0 : i32
    %c0_i32_0 = arith.constant 0 : i32
    %c0_i32_1 = arith.constant 0 : i32
    return %c0_i32, %c0_i32_0 : i32, i32
  }
  func.func @transform_2(%arg0: i32, %arg1: i32) -> (i32, i32) {
    %c0_i32 = arith.constant 0 : i32
    %c0_i32_0 = arith.constant 0 : i32
    %c0_i32_1 = arith.constant 0 : i32
    return %c0_i32, %c0_i32_0 : i32, i32
  }
  func.func @transform_3(%arg0: i32, %arg1: i32) -> (i32, i32) {
    %c0_i32 = arith.constant 0 : i32
    %c0_i32_0 = arith.constant 0 : i32
    %c0_i32_1 = arith.constant 0 : i32
    return %c0_i32, %c0_i32_0 : i32, i32
  }
  func.func @transform_4(%arg0: i32, %arg1: i32) -> (i32, i32) {
    %c0_i32 = arith.constant 0 : i32
    %c0_i32_0 = arith.constant 0 : i32
    %c0_i32_1 = arith.constant 0 : i32
    return %c0_i32, %c0_i32_0 : i32, i32
  }
  func.func @transform_5(%arg0: i32, %arg1: i32) -> (i32, i32, i32) {
    %c0_i32 = arith.constant 0 : i32
    %c0_i32_0 = arith.constant 0 : i32
    return %arg0, %c0_i32, %arg1 : i32, i32, i32
  }
}

</mosaic_0001>

<bundles_post_ra>
// kernel: tpu_custom_call.1
= control target key start
LH: loop header
LB: loop body
LE: loop exit
PB: predicated region body
PF: predicated region fallthrough
CT: control target
= control target key end

     0   :  { %10 = vsyncpa [#allocation3], 0  ;;  %s885_s0 = inlined_call_operand.vmem [shape: f32[2,4,256], index: 0, kind: input, shape index: {}]   ;;  %s886_s1 = inlined_call_operand.vmem [shape: f32[12,4], index: 1, kind: input, shape index: {}]   ;;  %s887_s2 = inlined_call_operand.vmem [shape: f32[12,1], index: 2, kind: input, shape index: {}]   ;;  %s888_s3 = inlined_call_operand.vmem [shape: f32[8,12], index: 3, kind: input, shape index: {}]   ;;  %s889_s4 = inlined_call_operand.vmem [shape: f32[8,1], index: 4, kind: input, shape index: {}]   ;;  %s890_s5 = inlined_call_operand.hbm [shape: f32[2,8,256], index: 5, kind: output, shape index: {}]  }
   0x1   :  { %12 = vsyncpa [#allocation3 + $0x1], 0  ;;  %s752_s18 = smov 0   ;;  %s754_s19 = smov 0  }
   0x2   :  { %s756_s20 = smov 0   ;;  %s758_s21 = smov 0  }
   0x3   :  { %s760_s22 = smov 0   ;;  %s762_s23 = smov 0  }
   0x4 LB: > { %s549_s24 = sadd.s32 4294967295, %s716_s23   ;;  %s550_s25 = sadd.s32 4294967294, %s716_s23   ;;  %s716_s23 = sphi %s762_s23, %s18_s23   ;;  %s712_s22 = sphi %s760_s22, %s897_s22   ;;  %s708_s21 = sphi %s758_s21, %s896_s21   ;;  %s704_s20 = sphi %s756_s20, %s895_s20   ;;  %s700_s19 = sphi %s754_s19, %s894_s19   ;;  %s696_s18 = sphi %s752_s18, %s893_s18  }
   0x5   : > { %s30_s26 = sadd.s32 1, %s712_s22  ;;  %s151_s27 = sadd.s32 1, %s704_s20 }
   0x6   : > { %p32_p0 = scmp.ge.s32.totalorder %s30_s26, 2  ;;  %p161_p1 = scmp.ne.s32.totalorder %s704_s20, %s700_s19 }
   0x7   : > { %p162_p2 = scmp.eq.s32.totalorder %s549_s24, 1  ;;  %p167_p3 = scmp.ne.s32.totalorder %s700_s19, %s696_s18 }
   0x8   : > { %s899_s26 = smov (%p32_p0, %s30_s26), 0  ;;  %p168_p5 = scmp.eq.s32.totalorder %s550_s25, 1 }
   0x9   : > { %p792_p4 = por %p162_p2, %p161_p1  ;;  %s146_s29 = ssub.s32 %s712_s22, %s899_s26 }
   0xa   : > { %p553_p6 = scmp.ge.s32.totalorder %s716_s23, 1  ;;  %p149_p7 = scmp.eq.s32.totalorder %s146_s29, 0 }
   0xb   : > { %p799_p8 = por %p168_p5, %p167_p3  ;;  %p211_p9 = scmp.lt.s32.totalorder %s716_s23, 3 }
   0xc   : > { %s805_s6 = scalar_select %p149_p7, %s704_s20, %s151_s27  }
   0xd   : > { %p212_p10 = pnand %p553_p6, %p211_p9 }
   0xe   : > { %p244_p11 = scmp.lt.s32.totalorder (!%p212_p10), %s708_s21, 1  ;;  %v718_v0 = vmov (!%p212_p10), 0.0   ;;  %v719_v1 = vmov (!%p212_p10), 0   ;;  %v257_v2 = vld [vmem:[%s887_s2] sm:$0xff] (!%p212_p10)  ;;  %v258_v3 = vld [vmem:[%s887_s2 + $0x8] sm:$0xf] (!%p212_p10) }
   0xf   : > { %215 = sbr.rel (%p212_p10) target bundleno = 489 (0x1e9), region = 40  ;;  %347 = vmatprep.mubr.f32.mxu0 (!%p212_p10), %v718_v0  ;;  %635 = vset.pattern.permute.xlu0 (!%p212_p10), %v719_v1  ;;  %vm278_vm0 = vcmask (!%p212_p10), 1043456   ;;  %v255_v6 = vld [vmem:[%s886_s1] sm:$0xff] (!%p212_p10)  ;;  %vm271_vm1 = vcmask (!%p212_p10), 31744   ;;  %v256_v7 = vld [vmem:[%s886_s1 + $0x8] sm:$0xf] (!%p212_p10) }
  0x10   : > { %261 = vperm.xlu0 (!%p212_p10), %635, %v257_v2   ;;  %445 = vmatprep.mubr.f32.mxu1 (!%p212_p10), %v718_v0  ;;  %v365_v8 = vld [vmem:[%s889_s4] sm:$0xff] (!%p212_p10)  ;;  %vm720_vm2 = vmmov (!%p212_p10), 1   ;;  %vm371_vm4 = vcmask (!%p212_p10), 97280   ;;  %s570_s11 = sshll.u32 (!%p212_p10), %s708_s21, 8 }
  0x11   : > { %636 = vset.pattern.permute.xlu1 (!%p212_p10), %v719_v1  ;;  %vm572_vm3 = vmpackc.low (!%p212_p10), %vm278_vm0, %vm720_vm2  ;;  %v364_v25 = vld [vmem:[%s888_s3] sm:$0xff] (!%p212_p10)  ;;  %s838_s16 = scalar_lea.hbm (!%p212_p10), %s890_s5, %s570_s11 }
  0x12   : > { %368 = vperm.xlu1 (!%p212_p10), %636, %v365_v8  }
  0x14   : > { %266 = vperm.xlu0 (!%p212_p10), %635, %v258_v3  }
  0x16   : > { %s245_s9 = scalar_select %p244_p11, %s708_s21, 1 }
  0x17   : > { %s721_s21 = smov [#allocation2]  }
  0x18   : > { %s569_s12 = sshll.u32 %s245_s9, 3  ;;  %s240_s9 = sand.u32 1, %s700_s19  }
  0x19   : > { %s251_s15 = scalar_lea.vmem %s885_s0, %s569_s12  ;;  %s554_s10 = sshll.u32 %s240_s9, 4 }
  0x1a   : > { %v254_v4 = vld [vmem:[%s251_s15] sm:$0xff]  ;;  %s242_s12 = scalar_lea.vmem [#allocation2], %s554_s10  ;;  %s457_s17 = scalar_lea.sflag [#allocation3], %s240_s9 }
  0x1b   : > { %v270_v5 = vcombine.high %v254_v4, %v254_v4  ;;  %s473_s13 = sshll.u32 %s242_s12, 4  ;;  %s642_s25 = sshll.u32 %s721_s21, 4  ;;  %s840_s13 = int_to_ptr.vmem [resolvable:$true] %s473_s13  ;;  %s643_s25 = int_to_ptr.vmem [resolvable:$false] %s642_s25 }
  0x1c   : > { %s638_s24 = scalar_lea.vmem %s840_s13, 256  ;;  %s644_s27 = scalar_lea.vmem %s643_s25, 512 }
  0x1d   : > { %557 = vmatprep.subr.msk.mxu0 %vm278_vm0, %v270_v5  ;;  %p639_p12 = scmp.ne.s32.totalorder %s840_s13, %s638_s24  ;;  %p645_p1 = scmp.lt.s32.totalorder %s840_s13, %s643_s25 }
  0x1e   : > { %558 = vmatpush1.msk.msra.mxu0 %vm278_vm0, %v254_v4  ;;  %p646_p2 = scmp.lt.s32.totalorder %s644_s27, %s638_s24 }
  0x1f   : > { %559 = vmatmul.mubr.msk.f32.vlgmr.msra.gmra.mrb[0].mxu0 %vm271_vm1, %v255_v6  ;;  %p640_p13 = pnand %p639_p12, %p792_p4 }
  0x20   : > { %353 = vmatprep.mubr.f32.mxu0 %v718_v0  ;;  %p647_p3 = por %p646_p2, %p645_p1 }
  0x21   : > { %p641_p0 = pneg %p640_p13 }
  0x23   : > { %560 = vmatmul.mubr.msk.f32.gmra.mrb[2].mxu0 %vm271_vm1, %v256_v7  ;;  %p648_p5 = pnand %p647_p3, %p641_p0 }
  0x8f   : > { %v262_v9 = vpop.permute.xlu0 %261 }
  0x91   : > { %v369_v26 = vpop.permute.xlu1 %368 }
  0x93   : > { %v267_v13 = vpop.permute.xlu0 %266 }
  0xf2   : > { %v349_v10 = vpop.f32.mrb[0].mxu0 }
  0xf3   : > { %v351_v11 = vpop.f32.mrb[1].mxu0  ;;  %v350_v12 = vadd.f32 %v349_v10, %v262_v9 }
  0xf4   : > { %v352_v14 = vadd.f32 %v351_v11, %v262_v9 }
  0xf5   : > { %v360_v19 = vmax.f32 %v350_v12, 0.0 }
  0xf6   : > { %v355_v15 = vpop.f32.mrb[2].mxu0  ;;  %v361_v21 = vmax.f32 %v352_v14, 0.0 }
  0xf7   : > { %v356_v16 = vadd.f32 %v355_v15, %v267_v13  ;;  %v357_v17 = vpop.f32.mrb[3].mxu0 }
  0xf8   : > { %v358_v18 = vadd.f32 %v357_v17, %v267_v13 }
  0xf9   : > { %v362_v20 = vmax.f32 %v356_v16, 0.0 }
  0xfa   : > { %v363_v22 = vmax.f32 %v358_v18, 0.0 }
  0xfb   : > { %v574_v23 = vpack.c.bf16 %v362_v20, %v360_v19 }
  0xfc   : > { %v571_v24 = vpack.c.bf16 %v363_v22, %v361_v21 }
  0xfe   : > { %573 = vmatprep.subr.msk.bf16.mxu1 %vm572_vm3, %v571_v24 }
  0xff   : > { %576 = vmatpush1.bf16.msk.msra.mxu1 %vm572_vm3, %v574_v23 }
 0x102   : > { %563 = vmatmul.mubr.msk.f32.vlgmr.msra.gmra.mrb[0].mxu1 %vm371_vm4, %v364_v25 }
 0x1d5   : > { %v447_v27 = vpop.f32.mrb[0].mxu1 }
 0x1d6   : > { %v448_v28 = vadd.f32 %v447_v27, %v369_v26  ;;  %v449_v29 = vpop.f32.mrb[1].mxu1 }
 0x1d7   : > { %v450_v30 = vadd.f32 %v449_v29, %v369_v26 }
 0x1d8   : > { %v452_v31 = vmax.f32 %v448_v28, 0.0 }
 0x1d9   : > { %v453_v32 = vmax.f32 %v450_v30, 0.0 }
 0x1da   : > { %454 = vst [vmem:[%s242_s12] sm:$0xff] %v452_v31 }
 0x1db   : > { %455 = vst [vmem:[%s242_s12 + $0x8] sm:$0xff] %v453_v32 }
 0x1dc   : > { %651 = shalt.err (!%p648_p5)
}
 0x1dd   : > { %s652_s29 = scalar_lea.hbm %s838_s16, 256  ;;  %s656_s9 = scalar_lea.hbm %s890_s5, 512 }
 0x1de   : > { %p653_p6 = scmp.ne.s32.totalorder %s838_s16, %s652_s29  ;;  %p657_p10 = scmp.lt.u32.totalorder %s838_s16, %s890_s5 }
 0x1df   : > { %p658_p11 = scmp.lt.u32.totalorder %s656_s9, %s652_s29  ;;  %p660_p13 = scmp.lt.u32.totalorder %s652_s29, %s838_s16 }
 0x1e0   : > { %p654_p7 = pnand %p653_p6, %p792_p4 }
 0x1e1   : > { %p659_p12 = por %p658_p11, %p657_p10 }
 0x1e2   : > { %p655_p9 = pneg %p654_p7 }
 0x1e3   : > { %p661_p0 = por %p660_p13, %p659_p12 }
 0x1e5   : > { %p662_p1 = pnand %p661_p0, %p655_p9 }
 0x1e7   : > { %665 = shalt.err (!%p662_p1)
}
 0x1e8   : > { %577 = dma.vmem_to_hbm [thread:$0]  (%p792_p4), %s840_s13, 256, %s838_s16, %s457_s17  }
 0x1e9 PF: > { %p583_p2 = scmp.ge.s32.totalorder %s716_s23, 2  ;;  %s485_s12 = sand.u32 1, %s696_s18  }
 0x1ea   : > { %s486_s14 = scalar_lea.sflag [#allocation3], %s485_s12 }
 0x1eb   : > { %p580_p3 = pnand %p583_p2, %p799_p8 }
 0x1ed   : > { %691 = dma.done.wait (!%p580_p3), %s486_s14, 256  }
 0x1ee   : > { %693 = vsyncadd (!%p580_p3), %s486_s14, 4294967040  ;;  %s18_s23 = sadd.s32 1, %s716_s23   ;;  %s893_s18 = smov %s700_s19 }
 0x1ef   : > { %p15_p5 = scmp.ge.s32.totalorder %s18_s23, 4   ;;  %s894_s19 = smov %s704_s20 }
 0x1f0   : > { %s895_s20 = smov %s805_s6  ;;  %s896_s21 = smov %s712_s22 }
 0x1f1   : > { %s897_s22 = smov %s899_s26  ;;  %17 = sbr.rel (!%p15_p5) target bundleno = 4 (0x4), region = 75 }
 0x1f8   :  { %491 = vsyncpa [#allocation3], 1 }
 0x1f9   :  { %493 = vsyncpa [#allocation3 + $0x1], 1 }

</bundles_post_ra>
